<compile_context>
chip_gen: v6e
topology: v6e:2x2x1
jax: 0.10.0
libtpu: 0.0.40
codegen_flags: <defaults>
</compile_context>

<pallas_src>
import functools

import jax
import jax.numpy as jnp
from jax import lax
from jax.experimental import pallas as pl
from jax.experimental.pallas import tpu as pltpu


def _mha_kernel(q_ref, kp_ref, vp_ref,
                wq_ref, bq_ref, wfc_ref, bfc_ref, gamma_ref, beta_ref,
                out_ref, *maybe_attn,
                n_head, d_k, d_v, compute_dtype, with_attn):
    attn_ref = maybe_attn[0] if with_attn else None
    eps = 1e-5
    inv_temp = 1.0 / (d_k ** 0.5)
    cdt = compute_dtype

    gamma = gamma_ref[0]                  # (D,)
    beta = beta_ref[0]                    # (D,)

    def layer_norm(x):                    # f32 elementwise (VPU); rsqrt -> EUP slot
        mu = jnp.mean(x, axis=-1, keepdims=True)
        var = jnp.mean((x - mu) ** 2, axis=-1, keepdims=True)
        return (x - mu) * lax.rsqrt(var + eps) * gamma + beta

    q_in = q_ref[0]                       # (tq, D) f32 residual
    q_ln = layer_norm(q_in).astype(cdt)

    # One wide MXU matmul for the Q projection of all heads (output width H*d_k),
    # with the 1/sqrt(d_k) scale folded in (touches (tq, H*d_k), not (tq, Lk)).
    q_all = (jnp.dot(q_ln, wq_ref[...], preferred_element_type=jnp.float32)
             + bq_ref[0]) * inv_temp      # (tq, H*d_k) f32

    # TODO(synk): for n_head >= 8 switch this static Python loop to
    # lax.fori_loop(..., unroll=True) to bound vreg live ranges.
    ctx_heads = []
    for h in range(n_head):
        qh = q_all[:, h * d_k:(h + 1) * d_k].astype(cdt)      # (tq, d_k)
        kh = kp_ref[0, h]                                     # (Lk, d_k)
        vh = vp_ref[0, h]                                     # (Lk, d_v)
        # scores = Qh @ Kh^T, contracting d_k directly (no transpose materialized).
        scores = lax.dot_general(qh, kh, (((1,), (1,)), ((), ())),
                                 preferred_element_type=jnp.float32)   # (tq, Lk)
        m = jnp.max(scores, axis=-1, keepdims=True)
        e = jnp.exp(scores - m)
        attn = e / jnp.sum(e, axis=-1, keepdims=True)         # exact softmax
        if with_attn:
            attn_ref[h, 0] = attn.astype(attn_ref.dtype)
        ctx_heads.append(jnp.dot(attn.astype(cdt), vh,
                                 preferred_element_type=jnp.float32))  # (tq, d_v)

    # Head-major concat (matches the module's permute+view) and ONE fc matmul whose
    # contraction depth is H*d_v instead of d_v per head.
    ctx_all = jnp.concatenate(ctx_heads, axis=-1).astype(cdt)          # (tq, H*d_v)
    fc = (jnp.dot(ctx_all, wfc_ref[...], preferred_element_type=jnp.float32)
          + bfc_ref[0])                                                # (tq, D)

    # residual add + post LayerNorm (same gamma/beta as the pre-norm on q).
    out_ref[0] = layer_norm(fc + q_in).astype(out_ref.dtype)


def multi_head_attention(q, k, v, params, *, n_head, d_k, d_v,
                         tq=128, compute_dtype=jnp.bfloat16,
                         attn_dtype=jnp.bfloat16, return_attn=True):
    """q, k, v: (B, L, d_model) float32.

    Returns (output (B, Lq, d_model) f32, attn (n_head * B, Lq, Lk) attn_dtype)
    when return_attn=True, otherwise only the output.  compute_dtype is the MXU
    operand dtype (bf16 preferred on v5e/v6e/v7x); accumulation is always f32.
    """
    B, Lq, D = q.shape
    Bk, Lk, Dk = k.shape
    Bv, Lv, Dv = v.shape
    assert (Bk, Dk) == (B, D) and (Bv, Dv) == (B, D)
    assert Lk == Lv, "attention requires len_k == len_v"

    wq, bq, wk, bk, wv, bv, wfc, bfc, gamma, beta = params
    assert wq.shape == (D, n_head * d_k) and wfc.shape == (n_head * d_v, D)

    cdt = jnp.dtype(compute_dtype)

    # ---- K/V projections hoisted to plain XLA (one wide matmul each; full MXU
    # utilization over (B, Lk)).  Head-major (B, H, L, d) layout, compute dtype.
    def _project(x, w, b, d):
        y = jnp.einsum('bld,de->ble', x.astype(cdt), w.astype(cdt),
                       preferred_element_type=jnp.float32) + b[0]
        return jnp.transpose(y.reshape(B, x.shape[1], n_head, d),
                             (0, 2, 1, 3)).astype(cdt)

    kp = _project(k, wk, bk, d_k)        # (B, H, Lk, d_k)
    vp = _project(v, wv, bv, d_v)        # (B, H, Lv, d_v)

    # q-tile size: full length, or a multiple of 8 sublanes that divides Lq.
    if tq is None or tq >= Lq:
        tq = Lq
    assert Lq % tq == 0 and (tq == Lq or tq % 8 == 0), (Lq, tq)
    nq = Lq // tq

    weights = (wq.astype(cdt), bq.astype(jnp.float32),
               wfc.astype(cdt), bfc.astype(jnp.float32),
               gamma.astype(jnp.float32), beta.astype(jnp.float32))

    kernel = functools.partial(_mha_kernel, n_head=n_head, d_k=d_k, d_v=d_v,
                               compute_dtype=cdt, with_attn=return_attn)

    full = lambda a: pl.BlockSpec(a.shape, lambda b, i: (0,) * a.ndim)

    in_specs = [
        pl.BlockSpec((1, tq, D), lambda b, i: (b, i, 0)),                  # q tile
        pl.BlockSpec((1, n_head, Lk, d_k), lambda b, i: (b, 0, 0, 0)),     # projected K
        pl.BlockSpec((1, n_head, Lv, d_v), lambda b, i: (b, 0, 0, 0)),     # projected V
    ] + [full(w) for w in weights]

    out_spec = pl.BlockSpec((1, tq, D), lambda b, i: (b, i, 0))
    out_struct = jax.ShapeDtypeStruct((B, Lq, D), jnp.float32)
    if return_attn:
        attn_spec = pl.BlockSpec((n_head, 1, tq, Lk), lambda b, i: (0, b, i, 0))
        attn_struct = jax.ShapeDtypeStruct((n_head, B, Lq, Lk), jnp.dtype(attn_dtype))
        out_shape = (out_struct, attn_struct)
        out_specs = (out_spec, attn_spec)
    else:
        out_shape = out_struct
        out_specs = out_spec

    # ---- Generation-aware VMEM budget (v5e/v6e: 128 MiB; v7x: 64 MiB per TC).
    # Pipelined blocks (q, kp, vp, out, attn) are double-buffered; constant-index
    # weights are counted once per buffer (2x) -- the old formula over-counted ~4x
    # and hard-clamped at 48 MiB.
    f32b = 4
    cbytes = cdt.itemsize
    blk = (2 * tq * D * f32b                           # q tile + out tile (f32)
           + n_head * Lk * d_k * cbytes                # projected K block
           + n_head * Lv * d_v * cbytes)               # projected V block
    if return_attn:
        blk += n_head * tq * Lk * jnp.dtype(attn_dtype).itemsize
    weight_bytes = sum(int(w.size) * w.dtype.itemsize for w in weights)
    est = 2 * blk + 2 * weight_bytes
    try:
        cap = int(getattr(pltpu.get_tpu_info(), "vmem_capacity_bytes", 64 * 2 ** 20))
    except Exception:
        cap = 64 * 2 ** 20                             # conservative fallback
    vmem_limit = int(min(max(2 * est, 32 * 2 ** 20), cap - 8 * 2 ** 20))

    result = pl.pallas_call(
        kernel,
        out_shape=out_shape,
        grid_spec=pltpu.PrefetchScalarGridSpec(
            num_scalar_prefetch=0,
            grid=(B, nq),
            in_specs=in_specs,
            out_specs=out_specs,
        ),
        compiler_params=pltpu.CompilerParams(
            dimension_semantics=("parallel", "parallel"),
            vmem_limit_bytes=vmem_limit,
        ),
    )(q, kp, vp, *weights)

    if return_attn:
        out, attn = result
        # PyTorch returns attn of shape (n_head * B, Lq, Lk) with head-major flattening.
        return out, attn.reshape(n_head * B, Lq, Lk)
    return result


def _reference(q, k, v, params, *, n_head, d_k, d_v):
    """Pure-JAX reference mirroring the PyTorch forward (eval mode)."""
    wq, bq, wk, bk, wv, bv, wfc, bfc, gamma, beta = params
    eps = 1e-5
    B, Lq, D = q.shape
    Lk = k.shape[1]

    def ln(x):
        mu = jnp.mean(x, axis=-1, keepdims=True)
        var = jnp.mean((x - mu) ** 2, axis=-1, keepdims=True)
        return (x - mu) / jnp.sqrt(var + eps) * gamma[0] + beta[0]

    residual = q
    qn = ln(q)
    Q = (qn @ wq + bq[0]).reshape(B, Lq, n_head, d_k)
    K = (k @ wk + bk[0]).reshape(B, Lk, n_head, d_k)
    V = (v @ wv + bv[0]).reshape(B, Lk, n_head, d_v)
    Q = jnp.transpose(Q, (2, 0, 1, 3)).reshape(-1, Lq, d_k)
    K = jnp.transpose(K, (2, 0, 1, 3)).reshape(-1, Lk, d_k)
    V = jnp.transpose(V, (2, 0, 1, 3)).reshape(-1, Lk, d_v)
    scores = jnp.einsum('bqd,bkd->bqk', Q, K) / (d_k ** 0.5)
    attn = jax.nn.softmax(scores, axis=2)
    out = jnp.einsum('bqk,bkd->bqd', attn, V)
    out = out.reshape(n_head, B, Lq, d_v)
    out = jnp.transpose(out, (1, 2, 0, 3)).reshape(B, Lq, n_head * d_v)
    out = out @ wfc + bfc[0]
    out = ln(out + residual)
    return out, attn


if __name__ == "__main__":
    # Small, module-consistent shapes; L=32 with tq=16 exercises the q-tile grid axis.
    B, L = 2, 32
    d_model, n_head, d_k, d_v = 32, 2, 16, 16

    key = jax.random.PRNGKey(0)
    k_q, k_k, k_v, k_wq, k_wk, k_wv, k_fc, _ = jax.random.split(key, 8)

    q = jax.random.normal(k_q, (B, L, d_model), dtype=jnp.float32)
    k = jax.random.normal(k_k, (B, L, d_model), dtype=jnp.float32)
    v = jax.random.normal(k_v, (B, L, d_model), dtype=jnp.float32)

    # Parameter init mirrors the PyTorch module's __init__/reset_parameters.
    std_qk = (2.0 / (d_model + d_k)) ** 0.5
    std_v = (2.0 / (d_model + d_v)) ** 0.5
    std_fc = (2.0 / (n_head * d_v + d_model)) ** 0.5   # xavier_normal_

    wq = (jax.random.normal(k_wq, (d_model, n_head * d_k)) * std_qk).astype(jnp.float32)
    wk = (jax.random.normal(k_wk, (d_model, n_head * d_k)) * std_qk).astype(jnp.float32)
    wv = (jax.random.normal(k_wv, (d_model, n_head * d_v)) * std_v).astype(jnp.float32)
    wfc = (jax.random.normal(k_fc, (n_head * d_v, d_model)) * std_fc).astype(jnp.float32)
    bq = jnp.zeros((1, n_head * d_k), jnp.float32)
    bk = jnp.zeros((1, n_head * d_k), jnp.float32)
    bv = jnp.zeros((1, n_head * d_v), jnp.float32)
    bfc = jnp.zeros((1, d_model), jnp.float32)
    gamma = jnp.ones((1, d_model), jnp.float32)
    beta = jnp.zeros((1, d_model), jnp.float32)

    params = (wq, bq, wk, bk, wv, bv, wfc, bfc, gamma, beta)

    ref_out, ref_attn = _reference(q, k, v, params, n_head=n_head, d_k=d_k, d_v=d_v)

    # f32 MXU operands + f32 attn output: tight check.
    out32, attn32 = multi_head_attention(
        q, k, v, params, n_head=n_head, d_k=d_k, d_v=d_v, tq=16,
        compute_dtype=jnp.float32, attn_dtype=jnp.float32)
    jax.block_until_ready((out32, attn32))
    assert out32.shape == (B, L, d_model)
    assert attn32.shape == (n_head * B, L, L)
    assert jnp.allclose(out32, ref_out, atol=5e-3, rtol=5e-3)
    assert jnp.allclose(attn32, ref_attn, atol=5e-3, rtol=5e-3)

    # bf16 MXU operands + bf16 attn output (defaults, preferred on all generations).
    out16, attn16 = multi_head_attention(
        q, k, v, params, n_head=n_head, d_k=d_k, d_v=d_v, tq=16)
    jax.block_until_ready((out16, attn16))
    assert attn16.dtype == jnp.bfloat16
    assert jnp.allclose(out16, ref_out, atol=1e-1, rtol=1e-1)
    assert jnp.allclose(attn16.astype(jnp.float32), ref_attn, atol=5e-2, rtol=5e-2)

    # Attention probabilities skipped entirely (no attn HBM writeback at all).
    out_only = multi_head_attention(
        q, k, v, params, n_head=n_head, d_k=d_k, d_v=d_v, tq=16,
        compute_dtype=jnp.float32, return_attn=False)
    jax.block_until_ready(out_only)
    assert jnp.allclose(out_only, ref_out, atol=5e-3, rtol=5e-3)

    print("KERNEL_OK")
</pallas_src>

<mosaic_0001>
module attributes {stable_mosaic.version = 11 : i64} {
  func.func @_mha_kernel(%arg0: i32, %arg1: i32, %arg2: memref<1x16x32xf32, #tpu.memory_space<vmem>>, %arg3: memref<1x2x32x16xf32, #tpu.memory_space<vmem>>, %arg4: memref<1x2x32x16xf32, #tpu.memory_space<vmem>>, %arg5: memref<32x32xf32, #tpu.memory_space<vmem>>, %arg6: memref<1x32xf32, #tpu.memory_space<vmem>>, %arg7: memref<32x32xf32, #tpu.memory_space<vmem>>, %arg8: memref<1x32xf32, #tpu.memory_space<vmem>>, %arg9: memref<1x32xf32, #tpu.memory_space<vmem>>, %arg10: memref<1x32xf32, #tpu.memory_space<vmem>>, %arg11: memref<1x16x32xf32, #tpu.memory_space<vmem>>, %arg12: memref<2x1x16x32xf32, #tpu.memory_space<vmem>>) attributes {dimension_semantics = [#tpu.dimension_semantics<parallel>, #tpu.dimension_semantics<parallel>], iteration_bounds = array<i64: 2, 2>, scalar_prefetch = 0 : i64, scratch_operands = 0 : i64, tpu.core_type = #tpu.core_type<tc>, window_params = [{transform_indices = @transform_0, window_bounds = array<i64: 1, 16, 32>}, {transform_indices = @transform_1, window_bounds = array<i64: 1, 2, 32, 16>}, {transform_indices = @transform_2, window_bounds = array<i64: 1, 2, 32, 16>}, {pipeline_mode = #tpu.pipeline_mode<synchronous>, transform_indices = @transform_3, window_bounds = array<i64: 32, 32>}, {pipeline_mode = #tpu.pipeline_mode<synchronous>, transform_indices = @transform_4, window_bounds = array<i64: 1, 32>}, {pipeline_mode = #tpu.pipeline_mode<synchronous>, transform_indices = @transform_5, window_bounds = array<i64: 32, 32>}, {pipeline_mode = #tpu.pipeline_mode<synchronous>, transform_indices = @transform_6, window_bounds = array<i64: 1, 32>}, {pipeline_mode = #tpu.pipeline_mode<synchronous>, transform_indices = @transform_7, window_bounds = array<i64: 1, 32>}, {pipeline_mode = #tpu.pipeline_mode<synchronous>, transform_indices = @transform_8, window_bounds = array<i64: 1, 32>}, {transform_indices = @transform_9, window_bounds = array<i64: 1, 16, 32>}, {transform_indices = @transform_10, window_bounds = array<i64: 2, 1, 16, 32>}]} {
    %c0 = arith.constant 0 : index
    %c0_0 = arith.constant 0 : index
    %0 = vector.load %arg9[%c0, %c0_0] : memref<1x32xf32, #tpu.memory_space<vmem>>, vector<1x32xf32>
    %1 = vector.shape_cast %0 : vector<1x32xf32> to vector<32xf32>
    %c0_1 = arith.constant 0 : index
    %c0_2 = arith.constant 0 : index
    %2 = vector.load %arg10[%c0_1, %c0_2] : memref<1x32xf32, #tpu.memory_space<vmem>>, vector<1x32xf32>
    %3 = vector.shape_cast %2 : vector<1x32xf32> to vector<32xf32>
    %c0_3 = arith.constant 0 : index
    %c0_4 = arith.constant 0 : index
    %c0_5 = arith.constant 0 : index
    %4 = vector.load %arg2[%c0_3, %c0_4, %c0_5] : memref<1x16x32xf32, #tpu.memory_space<vmem>>, vector<1x16x32xf32>
    %5 = vector.shape_cast %4 : vector<1x16x32xf32> to vector<16x32xf32>
    %cst = arith.constant dense<0.000000e+00> : vector<16xf32>
    %6 = vector.multi_reduction <add>, %5, %cst [1] : vector<16x32xf32> to vector<16xf32>
    %7 = vector.shape_cast %6 : vector<16xf32> to vector<16x1xf32>
    %cst_6 = arith.constant 3.200000e+01 : f32
    %8 = vector.broadcast %cst_6 : f32 to vector<16x1xf32>
    %9 = arith.divf %7, %8 : vector<16x1xf32>
    %10 = vector.broadcast %9 : vector<16x1xf32> to vector<16x32xf32>
    %11 = arith.subf %5, %10 : vector<16x32xf32>
    %12 = arith.mulf %11, %11 : vector<16x32xf32>
    %cst_7 = arith.constant dense<0.000000e+00> : vector<16xf32>
    %13 = vector.multi_reduction <add>, %12, %cst_7 [1] : vector<16x32xf32> to vector<16xf32>
    %14 = vector.shape_cast %13 : vector<16xf32> to vector<16x1xf32>
    %cst_8 = arith.constant 3.200000e+01 : f32
    %15 = vector.broadcast %cst_8 : f32 to vector<16x1xf32>
    %16 = arith.divf %14, %15 : vector<16x1xf32>
    %17 = vector.broadcast %9 : vector<16x1xf32> to vector<16x32xf32>
    %18 = arith.subf %5, %17 : vector<16x32xf32>
    %cst_9 = arith.constant 9.99999974E-6 : f32
    %19 = vector.broadcast %cst_9 : f32 to vector<16x1xf32>
    %20 = arith.addf %16, %19 : vector<16x1xf32>
    %21 = math.rsqrt %20 : vector<16x1xf32>
    %22 = vector.broadcast %21 : vector<16x1xf32> to vector<16x32xf32>
    %23 = arith.mulf %18, %22 : vector<16x32xf32>
    %24 = vector.shape_cast %1 : vector<32xf32> to vector<1x32xf32>
    %25 = vector.broadcast %24 : vector<1x32xf32> to vector<16x32xf32>
    %26 = arith.mulf %23, %25 : vector<16x32xf32>
    %27 = vector.shape_cast %3 : vector<32xf32> to vector<1x32xf32>
    %28 = vector.broadcast %27 : vector<1x32xf32> to vector<16x32xf32>
    %29 = arith.addf %26, %28 : vector<16x32xf32>
    %c0_10 = arith.constant 0 : index
    %c0_11 = arith.constant 0 : index
    %30 = vector.load %arg5[%c0_10, %c0_11] : memref<32x32xf32, #tpu.memory_space<vmem>>, vector<32x32xf32>
    %cst_12 = arith.constant dense<0.000000e+00> : vector<16x32xf32>
    %31 = tpu.matmul %29, %30, %cst_12 {dimension_numbers = #tpu.dot_dimension_numbers<[1], [0], [0], [1], [0, 0, 1, 1], [], []>} : vector<16x32xf32>, vector<32x32xf32>, vector<16x32xf32> -> vector<16x32xf32>
    %c0_13 = arith.constant 0 : index
    %c0_14 = arith.constant 0 : index
    %32 = vector.load %arg6[%c0_13, %c0_14] : memref<1x32xf32, #tpu.memory_space<vmem>>, vector<1x32xf32>
    %33 = vector.shape_cast %32 : vector<1x32xf32> to vector<32xf32>
    %34 = vector.shape_cast %33 : vector<32xf32> to vector<1x32xf32>
    %35 = vector.broadcast %34 : vector<1x32xf32> to vector<16x32xf32>
    %36 = arith.addf %31, %35 : vector<16x32xf32>
    %cst_15 = arith.constant 2.500000e-01 : f32
    %37 = vector.broadcast %cst_15 : f32 to vector<16x32xf32>
    %38 = arith.mulf %36, %37 : vector<16x32xf32>
    %39 = vector.extract_strided_slice %38 {offsets = [0, 0], sizes = [16, 16], strides = [1, 1]} : vector<16x32xf32> to vector<16x16xf32>
    %c0_16 = arith.constant 0 : index
    %c0_17 = arith.constant 0 : index
    %c0_18 = arith.constant 0 : index
    %c0_19 = arith.constant 0 : index
    %40 = vector.load %arg3[%c0_16, %c0_17, %c0_18, %c0_19] : memref<1x2x32x16xf32, #tpu.memory_space<vmem>>, vector<1x1x32x16xf32>
    %41 = vector.shape_cast %40 : vector<1x1x32x16xf32> to vector<32x16xf32>
    %c0_20 = arith.constant 0 : index
    %c0_21 = arith.constant 0 : index
    %c0_22 = arith.constant 0 : index
    %c0_23 = arith.constant 0 : index
    %42 = vector.load %arg4[%c0_20, %c0_21, %c0_22, %c0_23] : memref<1x2x32x16xf32, #tpu.memory_space<vmem>>, vector<1x1x32x16xf32>
    %43 = vector.shape_cast %42 : vector<1x1x32x16xf32> to vector<32x16xf32>
    %cst_24 = arith.constant dense<0.000000e+00> : vector<16x32xf32>
    %44 = tpu.matmul %39, %41, %cst_24 {dimension_numbers = #tpu.dot_dimension_numbers<[1], [1], [0], [0], [0, 0, 1, 0], [], []>} : vector<16x16xf32>, vector<32x16xf32>, vector<16x32xf32> -> vector<16x32xf32>
    %cst_25 = arith.constant dense<0xFF800000> : vector<16xf32>
    %45 = vector.multi_reduction <maximumf>, %44, %cst_25 [1] : vector<16x32xf32> to vector<16xf32>
    %46 = vector.shape_cast %45 : vector<16xf32> to vector<16x1xf32>
    %47 = vector.broadcast %46 : vector<16x1xf32> to vector<16x32xf32>
    %48 = arith.subf %44, %47 : vector<16x32xf32>
    %49 = math.exp %48 : vector<16x32xf32>
    %cst_26 = arith.constant dense<0.000000e+00> : vector<16xf32>
    %50 = vector.multi_reduction <add>, %49, %cst_26 [1] : vector<16x32xf32> to vector<16xf32>
    %51 = vector.shape_cast %50 : vector<16xf32> to vector<16x1xf32>
    %52 = vector.broadcast %51 : vector<16x1xf32> to vector<16x32xf32>
    %53 = arith.divf %49, %52 : vector<16x32xf32>
    %c0_27 = arith.constant 0 : index
    %c0_28 = arith.constant 0 : index
    %c0_29 = arith.constant 0 : index
    %c0_30 = arith.constant 0 : index
    %54 = vector.load %arg12[%c0_27, %c0_28, %c0_29, %c0_30] : memref<2x1x16x32xf32, #tpu.memory_space<vmem>>, vector<1x1x16x32xf32>
    %55 = vector.shape_cast %54 : vector<1x1x16x32xf32> to vector<16x32xf32>
    %56 = vector.shape_cast %53 : vector<16x32xf32> to vector<1x1x16x32xf32>
    tpu.vector_store %arg12[%c0_27, %c0_28, %c0_29, %c0_30], %56 {strides = array<i32>} : memref<2x1x16x32xf32, #tpu.memory_space<vmem>>, vector<1x1x16x32xf32>,
    %cst_31 = arith.constant dense<0.000000e+00> : vector<16x16xf32>
    %57 = tpu.matmul %53, %43, %cst_31 {dimension_numbers = #tpu.dot_dimension_numbers<[1], [0], [0], [1], [0, 0, 1, 1], [], []>} : vector<16x32xf32>, vector<32x16xf32>, vector<16x16xf32> -> vector<16x16xf32>
    %58 = vector.extract_strided_slice %38 {offsets = [0, 16], sizes = [16, 16], strides = [1, 1]} : vector<16x32xf32> to vector<16x16xf32>
    %c0_32 = arith.constant 0 : index
    %c1 = arith.constant 1 : index
    %c0_33 = arith.constant 0 : index
    %c0_34 = arith.constant 0 : index
    %59 = vector.load %arg3[%c0_32, %c1, %c0_33, %c0_34] : memref<1x2x32x16xf32, #tpu.memory_space<vmem>>, vector<1x1x32x16xf32>
    %60 = vector.shape_cast %59 : vector<1x1x32x16xf32> to vector<32x16xf32>
    %c0_35 = arith.constant 0 : index
    %c1_36 = arith.constant 1 : index
    %c0_37 = arith.constant 0 : index
    %c0_38 = arith.constant 0 : index
    %61 = vector.load %arg4[%c0_35, %c1_36, %c0_37, %c0_38] : memref<1x2x32x16xf32, #tpu.memory_space<vmem>>, vector<1x1x32x16xf32>
    %62 = vector.shape_cast %61 : vector<1x1x32x16xf32> to vector<32x16xf32>
    %cst_39 = arith.constant dense<0.000000e+00> : vector<16x32xf32>
    %63 = tpu.matmul %58, %60, %cst_39 {dimension_numbers = #tpu.dot_dimension_numbers<[1], [1], [0], [0], [0, 0, 1, 0], [], []>} : vector<16x16xf32>, vector<32x16xf32>, vector<16x32xf32> -> vector<16x32xf32>
    %cst_40 = arith.constant dense<0xFF800000> : vector<16xf32>
    %64 = vector.multi_reduction <maximumf>, %63, %cst_40 [1] : vector<16x32xf32> to vector<16xf32>
    %65 = vector.shape_cast %64 : vector<16xf32> to vector<16x1xf32>
    %66 = vector.broadcast %65 : vector<16x1xf32> to vector<16x32xf32>
    %67 = arith.subf %63, %66 : vector<16x32xf32>
    %68 = math.exp %67 : vector<16x32xf32>
    %cst_41 = arith.constant dense<0.000000e+00> : vector<16xf32>
    %69 = vector.multi_reduction <add>, %68, %cst_41 [1] : vector<16x32xf32> to vector<16xf32>
    %70 = vector.shape_cast %69 : vector<16xf32> to vector<16x1xf32>
    %71 = vector.broadcast %70 : vector<16x1xf32> to vector<16x32xf32>
    %72 = arith.divf %68, %71 : vector<16x32xf32>
    %c1_42 = arith.constant 1 : index
    %c0_43 = arith.constant 0 : index
    %c0_44 = arith.constant 0 : index
    %c0_45 = arith.constant 0 : index
    %73 = vector.load %arg12[%c1_42, %c0_43, %c0_44, %c0_45] : memref<2x1x16x32xf32, #tpu.memory_space<vmem>>, vector<1x1x16x32xf32>
    %74 = vector.shape_cast %73 : vector<1x1x16x32xf32> to vector<16x32xf32>
    %75 = vector.shape_cast %72 : vector<16x32xf32> to vector<1x1x16x32xf32>
    tpu.vector_store %arg12[%c1_42, %c0_43, %c0_44, %c0_45], %75 {strides = array<i32>} : memref<2x1x16x32xf32, #tpu.memory_space<vmem>>, vector<1x1x16x32xf32>,
    %cst_46 = arith.constant dense<0.000000e+00> : vector<16x16xf32>
    %76 = tpu.matmul %72, %62, %cst_46 {dimension_numbers = #tpu.dot_dimension_numbers<[1], [0], [0], [1], [0, 0, 1, 1], [], []>} : vector<16x32xf32>, vector<32x16xf32>, vector<16x16xf32> -> vector<16x16xf32>
    %77 = tpu.concatenate %57, %76 in 1 : vector<16x16xf32>, vector<16x16xf32> -> vector<16x32xf32>
    %c0_47 = arith.constant 0 : index
    %c0_48 = arith.constant 0 : index
    %78 = vector.load %arg7[%c0_47, %c0_48] : memref<32x32xf32, #tpu.memory_space<vmem>>, vector<32x32xf32>
    %cst_49 = arith.constant dense<0.000000e+00> : vector<16x32xf32>
    %79 = tpu.matmul %77, %78, %cst_49 {dimension_numbers = #tpu.dot_dimension_numbers<[1], [0], [0], [1], [0, 0, 1, 1], [], []>} : vector<16x32xf32>, vector<32x32xf32>, vector<16x32xf32> -> vector<16x32xf32>
    %c0_50 = arith.constant 0 : index
    %c0_51 = arith.constant 0 : index
    %80 = vector.load %arg8[%c0_50, %c0_51] : memref<1x32xf32, #tpu.memory_space<vmem>>, vector<1x32xf32>
    %81 = vector.shape_cast %80 : vector<1x32xf32> to vector<32xf32>
    %82 = vector.shape_cast %81 : vector<32xf32> to vector<1x32xf32>
    %83 = vector.broadcast %82 : vector<1x32xf32> to vector<16x32xf32>
    %84 = arith.addf %79, %83 : vector<16x32xf32>
    %85 = arith.addf %84, %5 : vector<16x32xf32>
    %cst_52 = arith.constant dense<0.000000e+00> : vector<16xf32>
    %86 = vector.multi_reduction <add>, %85, %cst_52 [1] : vector<16x32xf32> to vector<16xf32>
    %87 = vector.shape_cast %86 : vector<16xf32> to vector<16x1xf32>
    %cst_53 = arith.constant 3.200000e+01 : f32
    %88 = vector.broadcast %cst_53 : f32 to vector<16x1xf32>
    %89 = arith.divf %87, %88 : vector<16x1xf32>
    %90 = vector.broadcast %89 : vector<16x1xf32> to vector<16x32xf32>
    %91 = arith.subf %85, %90 : vector<16x32xf32>
    %92 = arith.mulf %91, %91 : vector<16x32xf32>
    %cst_54 = arith.constant dense<0.000000e+00> : vector<16xf32>
    %93 = vector.multi_reduction <add>, %92, %cst_54 [1] : vector<16x32xf32> to vector<16xf32>
    %94 = vector.shape_cast %93 : vector<16xf32> to vector<16x1xf32>
    %cst_55 = arith.constant 3.200000e+01 : f32
    %95 = vector.broadcast %cst_55 : f32 to vector<16x1xf32>
    %96 = arith.divf %94, %95 : vector<16x1xf32>
    %97 = vector.broadcast %89 : vector<16x1xf32> to vector<16x32xf32>
    %98 = arith.subf %85, %97 : vector<16x32xf32>
    %cst_56 = arith.constant 9.99999974E-6 : f32
    %99 = vector.broadcast %cst_56 : f32 to vector<16x1xf32>
    %100 = arith.addf %96, %99 : vector<16x1xf32>
    %101 = math.rsqrt %100 : vector<16x1xf32>
    %102 = vector.broadcast %101 : vector<16x1xf32> to vector<16x32xf32>
    %103 = arith.mulf %98, %102 : vector<16x32xf32>
    %104 = vector.shape_cast %1 : vector<32xf32> to vector<1x32xf32>
    %105 = vector.broadcast %104 : vector<1x32xf32> to vector<16x32xf32>
    %106 = arith.mulf %103, %105 : vector<16x32xf32>
    %107 = vector.shape_cast %3 : vector<32xf32> to vector<1x32xf32>
    %108 = vector.broadcast %107 : vector<1x32xf32> to vector<16x32xf32>
    %109 = arith.addf %106, %108 : vector<16x32xf32>
    %c0_57 = arith.constant 0 : index
    %c0_58 = arith.constant 0 : index
    %c0_59 = arith.constant 0 : index
    %110 = vector.load %arg11[%c0_57, %c0_58, %c0_59] : memref<1x16x32xf32, #tpu.memory_space<vmem>>, vector<1x16x32xf32>
    %111 = vector.shape_cast %110 : vector<1x16x32xf32> to vector<16x32xf32>
    %112 = vector.shape_cast %109 : vector<16x32xf32> to vector<1x16x32xf32>
    tpu.vector_store %arg11[%c0_57, %c0_58, %c0_59], %112 {strides = array<i32>} : memref<1x16x32xf32, #tpu.memory_space<vmem>>, vector<1x16x32xf32>,
    return
  }
  func.func @transform_0(%arg0: i32, %arg1: i32) -> (i32, i32, i32) {
    %c0_i32 = arith.constant 0 : i32
    %c0_i32_0 = arith.constant 0 : i32
    return %arg0, %arg1, %c0_i32 : i32, i32, i32
  }
  func.func @transform_1(%arg0: i32, %arg1: i32) -> (i32, i32, i32, i32) {
    %c0_i32 = arith.constant 0 : i32
    %c0_i32_0 = arith.constant 0 : i32
    %c0_i32_1 = arith.constant 0 : i32
    %c0_i32_2 = arith.constant 0 : i32
    return %arg0, %c0_i32, %c0_i32_0, %c0_i32_1 : i32, i32, i32, i32
  }
  func.func @transform_2(%arg0: i32, %arg1: i32) -> (i32, i32, i32, i32) {
    %c0_i32 = arith.constant 0 : i32
    %c0_i32_0 = arith.constant 0 : i32
    %c0_i32_1 = arith.constant 0 : i32
    %c0_i32_2 = arith.constant 0 : i32
    return %arg0, %c0_i32, %c0_i32_0, %c0_i32_1 : i32, i32, i32, i32
  }
  func.func @transform_3(%arg0: i32, %arg1: i32) -> (i32, i32) {
    %c0_i32 = arith.constant 0 : i32
    %c0_i32_0 = arith.constant 0 : i32
    %c0_i32_1 = arith.constant 0 : i32
    return %c0_i32, %c0_i32_0 : i32, i32
  }
  func.func @transform_4(%arg0: i32, %arg1: i32) -> (i32, i32) {
    %c0_i32 = arith.constant 0 : i32
    %c0_i32_0 = arith.constant 0 : i32
    %c0_i32_1 = arith.constant 0 : i32
    return %c0_i32, %c0_i32_0 : i32, i32
  }
  func.func @transform_5(%arg0: i32, %arg1: i32) -> (i32, i32) {
    %c0_i32 = arith.constant 0 : i32
    %c0_i32_0 = arith.constant 0 : i32
    %c0_i32_1 = arith.constant 0 : i32
    return %c0_i32, %c0_i32_0 : i32, i32
  }
  func.func @transform_6(%arg0: i32, %arg1: i32) -> (i32, i32) {
    %c0_i32 = arith.constant 0 : i32
    %c0_i32_0 = arith.constant 0 : i32
    %c0_i32_1 = arith.constant 0 : i32
    return %c0_i32, %c0_i32_0 : i32, i32
  }
  func.func @transform_7(%arg0: i32, %arg1: i32) -> (i32, i32) {
    %c0_i32 = arith.constant 0 : i32
    %c0_i32_0 = arith.constant 0 : i32
    %c0_i32_1 = arith.constant 0 : i32
    return %c0_i32, %c0_i32_0 : i32, i32
  }
  func.func @transform_8(%arg0: i32, %arg1: i32) -> (i32, i32) {
    %c0_i32 = arith.constant 0 : i32
    %c0_i32_0 = arith.constant 0 : i32
    %c0_i32_1 = arith.constant 0 : i32
    return %c0_i32, %c0_i32_0 : i32, i32
  }
  func.func @transform_9(%arg0: i32, %arg1: i32) -> (i32, i32, i32) {
    %c0_i32 = arith.constant 0 : i32
    %c0_i32_0 = arith.constant 0 : i32
    return %arg0, %arg1, %c0_i32 : i32, i32, i32
  }
  func.func @transform_10(%arg0: i32, %arg1: i32) -> (i32, i32, i32, i32) {
    %c0_i32 = arith.constant 0 : i32
    %c0_i32_0 = arith.constant 0 : i32
    %c0_i32_1 = arith.constant 0 : i32
    return %c0_i32, %arg0, %arg1, %c0_i32_0 : i32, i32, i32, i32
  }
}

</mosaic_0001>

<bundles_post_ra>
// kernel: tpu_custom_call.1
= control target key start
LH: loop header
LB: loop body
LE: loop exit
PB: predicated region body
PF: predicated region fallthrough
CT: control target
= control target key end

     0   :  { %s2114_s0 = inlined_call_operand.vmem [shape: f32[2,32,32], index: 0, kind: input, shape index: {}]   ;;  %s2115_s1 = inlined_call_operand.vmem [shape: f32[2,2,32,16], index: 1, kind: input, shape index: {}]   ;;  %s2116_s2 = inlined_call_operand.vmem [shape: f32[2,2,32,16], index: 2, kind: input, shape index: {}]   ;;  %s2117_s3 = inlined_call_operand.vmem [shape: f32[32,32], index: 3, kind: input, shape index: {}]   ;;  %s2118_s4 = inlined_call_operand.vmem [shape: f32[1,32], index: 4, kind: input, shape index: {}]   ;;  %s2119_s5 = inlined_call_operand.vmem [shape: f32[32,32], index: 5, kind: input, shape index: {}]   ;;  %s2120_s6 = inlined_call_operand.vmem [shape: f32[1,32], index: 6, kind: input, shape index: {}]   ;;  %s2121_s7 = inlined_call_operand.vmem [shape: f32[1,32], index: 7, kind: input, shape index: {}]   ;;  %s2122_s8 = inlined_call_operand.vmem [shape: f32[1,32], index: 8, kind: input, shape index: {}]   ;;  %s2123_s9 = inlined_call_operand.hbm [shape: f32[2,32,32], index: 9, kind: output, shape index: {0}]   ;;  %s2124_s10 = inlined_call_operand.hbm [shape: f32[2,2,32,32], index: 10, kind: output, shape index: {1}]  }
   0x1   :  { %2128 = sst [smem:[#allocation12_spill]] %s2114_s0 }
   0x2   :  { %2129 = sst [smem:[#allocation13_spill]] %s2115_s1 }
   0x3   :  { %2130 = sst [smem:[#allocation14_spill]] %s2116_s2 }
   0x4   :  { %2131 = sst [smem:[#allocation15_spill]] %s2117_s3 }
   0x5   :  { %16 = vsyncpa [#allocation3], 0 }
   0x6   :  { %18 = vsyncpa [#allocation3 + $0x1], 0 }
   0x7   :  { %19 = vsyncpa [#allocation5], 0 }
   0x8   :  { %21 = vsyncpa [#allocation5 + $0x1], 0  ;;  %s1786_s13 = smov 0   ;;  %s1788_s14 = smov 0  }
   0x9   :  { %s1790_s15 = smov 0   ;;  %s1792_s16 = smov 0  }
   0xa   :  { %s1794_s17 = smov 0   ;;  %s1796_s18 = smov 0  }
   0xb   :  { %s1798_s19 = smov 0   ;;  %s1800_s20 = smov 0  }
   0xc LB: > { %s1342_s21 = sadd.s32 4294967295, %s1717_s20   ;;  %s1343_s22 = sadd.s32 4294967294, %s1717_s20   ;;  %s1717_s20 = sphi %s1800_s20, %s27_s20   ;;  %s1713_s19 = sphi %s1798_s19, %s2150_s19   ;;  %s1709_s18 = sphi %s1796_s18, %s2149_s18   ;;  %s1705_s17 = sphi %s1794_s17, %s2148_s17   ;;  %s1701_s16 = sphi %s1792_s16, %s2147_s16   ;;  %s1697_s15 = sphi %s1790_s15, %s2146_s15   ;;  %s1693_s14 = sphi %s1788_s14, %s2145_s14   ;;  %s1689_s13 = sphi %s1786_s13, %s2144_s13  }
   0xd   : > { %s36_s23 = sadd.s32 1, %s1709_s18  ;;  %s39_s24 = sadd.s32 1, %s1713_s19 }
   0xe   : > { %p37_p0 = scmp.ge.s32.totalorder %s36_s23, 2  ;;  %p264_p1 = scmp.ne.s32.totalorder %s1697_s15, %s1693_s14 }
   0xf   : > { %p265_p2 = scmp.eq.s32.totalorder %s1342_s21, 3  ;;  %p270_p5 = scmp.ne.s32.totalorder %s1693_s14, %s1689_s13 }
  0x10   : > { %s2152_s23 = smov (%p37_p0, %s36_s23), 0  ;;  %s2154_s24 = smov (!%p37_p0, %s39_s24), %s1713_s19 }
  0x11   : > { %2132 = sst [smem:[#allocation10_spill]] %s2152_s23  ;;  %s250_s25 = ssub.s32 %s1709_s18, %s2152_s23 }
  0x12   : > { %p1837_p3 = por %p265_p2, %p264_p1  ;;  %p41_p4 = scmp.ge.s32.totalorder %s2154_s24, 2 }
  0x13   : > { %p271_p6 = scmp.eq.s32.totalorder %s1343_s22, 3  ;;  %p1346_p7 = scmp.ge.s32.totalorder %s1717_s20, 1 }
  0x14   : > { %s2156_s24 = smov (%p41_p4, %s2154_s24), 0  ;;  %p364_p9 = scmp.lt.s32.totalorder %s1717_s20, 5 }
  0x15   : > { %2134 = sst [smem:[#allocation11_spill]] %s2156_s24  ;;  %p1846_p8 = por %p271_p6, %p270_p5 }
  0x16   : > { %s249_s28 = ssub.s32 %s1713_s19, %s2156_s24  ;;  %s254_s29 = sadd.s32 1, %s1697_s15 }
  0x17   : > { %s251_s30 = sor.u32 %s250_s25, %s249_s28  ;;  %p365_p10 = pnand %p1346_p7, %p364_p9 }
  0x18   : > { %p252_p11 = scmp.eq.s32.totalorder %s251_s30, 0  ;;  %s1858_s12 = sshll.u32 (!%p365_p10), %s1701_s16, 1 }
  0x19   : > { %368 = sbr.rel (%p365_p10) target bundleno = 2424 (0x978), region = 56  ;;  %p422_p12 = scmp.lt.s32.totalorder (!%p365_p10), %s1705_s17, 1 }
  0x1a   : > { %s1855_s11 = scalar_select %p252_p11, %s1697_s15, %s254_s29  }
  0x1b   : > { %p424_p13 = scmp.lt.s32.totalorder (!%p365_p10), %s1858_s12, 3  ;;  %s2136_s0 = sld [smem:[#allocation12_spill]] (!%p365_p10) }
  0x1c   : > { %s2137_s3 = sld [smem:[#allocation15_spill]] (!%p365_p10) }
  0x1d   : > { %s2138_s1 = sld [smem:[#allocation13_spill]] (!%p365_p10) }
  0x1e   : > { %s1863_s21 = scalar_select %p422_p12, %s1705_s17, 1  ;;  %vm447_vm0 = vcmask 261120   ;;  %vm593_vm1 = vcmask 130048   ;;  %v1911_v27 = vld [vmem:[%s2121_s7] ss:$0 sm:$0xff] }
  0x1f   : > { %s425_s22 = scalar_select %p424_p13, %s1858_s12, 3  ;;  %v1916_v29 = vld [vmem:[%s2122_s8] ss:$0 sm:$0xff] }
  0x20   : > { %s1350_s24 = sshll.u32 %s1863_s21, 2  ;;  %s1400_s29 = sshll.u32 %s1863_s21, 6  ;;  %v1358_v38 = vld [vmem:[%s2118_s4] ss:$0 sm:$0xff] }
  0x21   : > { %s427_s25 = sadd.s32 %s1350_s24, %s425_s22  ;;  %s2139_s2 = sld [smem:[#allocation14_spill]] }
  0x22   : > { %s1351_s28 = sshll.u32 %s427_s25, 3  ;;  %v494_v14 = vld [vmem:[%s2137_s3 + $0x18] sm:$0xff]  ;;  %v493_v15 = vld [vmem:[%s2137_s3 + $0x10] sm:$0xff]  ;;  %v492_v16 = vld [vmem:[%s2137_s3 + $0x8] sm:$0xff]  ;;  %s1719_s25 = smov 112  }
  0x23   : > { %s429_s23 = scalar_lea.vmem %s2136_s0, %s1351_s28  ;;  %1438 = vmatprep.subr.mxu0 %v494_v14  ;;  %v491_v17 = vld [vmem:[%s2137_s3] sm:$0xff]  ;;  %s1900_s24 = scalar_lea.vmem %s2138_s1, %s1400_s29 }
  0x24   : > { %v1870_v0 = vld [vmem:[%s429_s23] sm:$0xff]  ;;  %v1872_v1 = vld [vmem:[%s429_s23 + $0x8] sm:$0xff]  ;;  %1439 = vmatpush3.msra.mxu0 %v494_v14  ;;  %v588_v18 = vld [vmem:[%s1900_s24 + $0x18] sm:$0xff]  ;;  %s1951_s21 = sand.u32 1, %s1693_s14   ;;  %s1393_s23 = sshll.u32 %s1705_s17, 2 }
  0x25   : > { %v448_v2 = vsel %vm447_vm0, %v1870_v0, 0.0  ;;  %v451_v3 = vsel %vm447_vm0, %v1872_v1, 0.0  ;;  %1440 = vmatprep.subr.mxu0 %v493_v15  ;;  %v587_v19 = vld [vmem:[%s1900_s24 + $0x10] sm:$0xff]  ;;  %1449 = vmatprep.subr.msk.mxu1 %vm593_vm1, %v588_v18  ;;  %v586_v36 = vld [vmem:[%s1900_s24 + $0x8] sm:$0xff]  ;;  %v585_v37 = vld [vmem:[%s1900_s24] sm:$0xff]  ;;  %s1347_s0 = sshll.u32 %s1951_s21, 4 }
  0x26   : > { %449 = vadd.xlane.f32.xlu0 %v448_v2  ;;  %1441 = vmatpush3.msra.mxu0 %v493_v15  ;;  %v1372_v63 = vld [vmem:[%s1900_s24 + $0x38] sm:$0xff] }
  0x27   : > { %1442 = vmatprep.subr.mxu0 %v492_v16  ;;  %1450 = vmatpush3.xpose.msk.msra.mxu1 %vm593_vm1, %v588_v18  ;;  %s1944_s22 = scalar_lea.vmem %s2139_s2, %s1400_s29  ;;  %s1348_s29 = sshll.u32 %s1951_s21, 5 }
  0x28   : > { %1443 = vmatpush3.msra.mxu0 %v492_v16  ;;  %1451 = vmatprep.subr.msk.mxu1 %vm593_vm1, %v587_v19  ;;  %v592_v59 = vld [vmem:[%s1944_s22 + $0x18] sm:$0xff]  ;;  %v591_v60 = vld [vmem:[%s1944_s22 + $0x10] sm:$0xff]  ;;  %v590_v61 = vld [vmem:[%s1944_s22 + $0x8] sm:$0xff]  ;;  %s1956_s28 = scalar_lea.vmem [#allocation4], %s1348_s29  ;;  %s413_s29 = scalar_lea.vmem [#allocation2], %s1347_s0 }
  0x29   : > { %1444 = vmatprep.subr.mxu0 %v491_v17  ;;  %v589_v62 = vld [vmem:[%s1944_s22] sm:$0xff]  ;;  %s1721_s0 = smov [#allocation2]  }
  0x2a   : > { %452 = vadd.xlane.f32.xlu0 %v451_v3  ;;  %1445 = vmatpush3.msra.mxu0 %v491_v17  ;;  %s1625_s30 = sshll.u32 %s1721_s0, 4  ;;  %s1626_s30 = int_to_ptr.vmem [resolvable:$false] %s1625_s30 }
  0x2b   : > { %1452 = vmatpush3.xpose.msk.msra.mxu1 %vm593_vm1, %v587_v19  ;;  %1460 = vmatprep.subr.mxu0 %v592_v59  ;;  %s1627_s16 = scalar_lea.vmem %s1626_s30, 512 }
  0x2c   : > { %1453 = vmatprep.subr.msk.mxu1 %vm593_vm1, %v586_v36 }
  0x2f   : > { %1454 = vmatpush3.xpose.msk.msra.mxu1 %vm593_vm1, %v586_v36 }
  0x30   : > { %1455 = vmatprep.subr.msk.mxu1 %vm593_vm1, %v585_v37 }
  0x33   : > { %1456 = vmatpush3.xpose.msk.msra.mxu1 %vm593_vm1, %v585_v37 }
  0xaf   : > { %v450_v4 = vpop.xlane.xlu0 %449 }
  0xb0   : > { %v455_v5 = vmul.f32 0.03125, %v450_v4 }
  0xb2   : > { %v457_v6 = vsub.f32 %v1870_v0, %v455_v5 }
  0xb3   : > { %v453_v7 = vpop.xlane.xlu0 %452 }
  0xb4   : > { %v456_v8 = vmul.f32 0.03125, %v453_v7  ;;  %v459_v9 = vmul.f32 %v457_v6, %v457_v6 }
  0xb6   : > { %v458_v10 = vsub.f32 %v1872_v1, %v456_v8  ;;  %v461_v11 = vsel %vm447_vm0, %v459_v9, 0.0  ;;  %v1371_v8 = vld [vmem:[%s1900_s24 + $0x30] sm:$0xff] }
  0xb7   : > { %462 = vadd.xlane.f32.xlu1 %v461_v11  ;;  %v1369_v11 = vld [vmem:[%s1900_s24 + $0x20] sm:$0xff] }
  0xb8   : > { %v460_v12 = vmul.f32 %v458_v10, %v458_v10 }
  0xba   : > { %v464_v13 = vsel %vm447_vm0, %v460_v12, 0.0 }
  0xbb   : > { %465 = vadd.xlane.f32.xlu1 %v464_v13 }
 0x140   : > { %v463_v20 = vpop.xlane.xlu1 %462 }
 0x141   : > { %v467_v21 = vmul.f32 0.03125, %v463_v20 }
 0x143   : > { %v469_v22 = vadd.f32 1e-05, %v467_v21 }
 0x144   : > { %v466_v23 = vpop.xlane.xlu1 %465 }
 0x145   : > { %1597 = vrsqrt.f32 %v469_v22  ;;  %v468_v24 = vmul.f32 0.03125, %v466_v23 }
 0x147   : > { %v470_v25 = vadd.f32 1e-05, %v468_v24 }
 0x149   : > { %1599 = vrsqrt.f32 %v470_v25 }
 0x152   : > { %v1598_v26 = vpop.eup %1597 }
 0x153   : > { %v473_v28 = vmul.f32 %v1598_v26, %v457_v6 }
 0x155   : > { %v481_v30 = vmul.f32 %v1911_v27, %v473_v28 }
 0x156   : > { %v1600_v31 = vpop.eup %1599 }
 0x157   : > { %v489_v32 = vadd.f32 %v1916_v29, %v481_v30  ;;  %v474_v33 = vmul.f32 %v1600_v31, %v458_v10  ;;  %v1370_v10 = vld [vmem:[%s1900_s24 + $0x28] sm:$0xff]  ;;  %v1376_v31 = vld [vmem:[%s1944_s22 + $0x38] sm:$0xff]  ;;  %s1720_s24 = smov 16  }
 0x158   : > { %1482 = vmatprep.subr.mxu1 %v1376_v31 }
 0x159   : > { %1446 = vmatprep.mubr.msk.f32.mxu0 %vm447_vm0, %v489_v32  ;;  %v482_v34 = vmul.f32 %v1911_v27, %v474_v33  ;;  %v1375_v32 = vld [vmem:[%s1944_s22 + $0x30] sm:$0xff]  ;;  %v1374_v33 = vld [vmem:[%s1944_s22 + $0x28] sm:$0xff] }
 0x15b   : > { %v490_v35 = vadd.f32 %v1916_v29, %v482_v34  ;;  %v1373_v34 = vld [vmem:[%s1944_s22 + $0x20] sm:$0xff]  ;;  %s2024_s22 = sadd.s32 %s1393_s23, %s1858_s12 }
 0x15d   : > { %1447 = vmatmul.mubr.msk.f32.vlgmr.msra.gmra.mxu0 %vm447_vm0, %v490_v35 }
 0x15e   : > { %1461 = vmatpush3.msra.mxu0 %v592_v59 }
 0x15f   : > { %1462 = vmatprep.subr.mxu0 %v591_v60 }
 0x160   : > { %1463 = vmatpush3.msra.mxu0 %v591_v60 }
 0x161   : > { %1464 = vmatprep.subr.mxu0 %v590_v61 }
 0x162   : > { %1465 = vmatpush3.msra.mxu0 %v590_v61 }
 0x163   : > { %1466 = vmatprep.subr.mxu0 %v589_v62 }
 0x164   : > { %1467 = vmatpush3.msra.mxu0 %v589_v62 }
 0x165   : > { %1471 = vmatprep.subr.msk.mxu0 %vm593_vm1, %v1372_v63 }
 0x21d   : > { %v1448_v39 = vpop.f32.mrf.mxu0 }
 0x21e   : > { %v580_v40 = vadd.f32 %v1448_v39, %v1358_v38 }
 0x21f   : > { %v574_v41 = vpop.f32.mrf.mxu0 }
 0x220   : > { %v575_v42 = vadd.f32 %v1358_v38, %v574_v41  ;;  %v584_v44 = vmul.f32 0.25, %v580_v40  ;;  %v1016_v41 = vld [vmem:[%s2119_s5 + $0x18] sm:$0xff] }
 0x222   : > { %v583_v43 = vmul.f32 0.25, %v575_v42  ;;  %v1015_v42 = vld [vmem:[%s2119_s5 + $0x10] sm:$0xff] }
 0x224   : > { %1457 = vmatprep.mubr.msk.f32.mxu1 %vm593_vm1, %v583_v43 }
 0x225   : > { %1458 = vmatmul.mubr.msk.f32.vlgmr.msra.gmra.mxu1 %vm593_vm1, %v584_v44 }
 0x226   : > { %1483 = vmatpush3.msra.mxu1 %v1376_v31 }
 0x227   : > { %1484 = vmatprep.subr.mxu1 %v1375_v32 }
 0x228   : > { %1485 = vmatpush3.msra.mxu1 %v1375_v32 }
 0x229   : > { %1486 = vmatprep.subr.mxu1 %v1374_v33 }
 0x22a   : > { %1487 = vmatpush3.msra.mxu1 %v1374_v33 }
 0x22b   : > { %1488 = vmatprep.subr.mxu1 %v1373_v34 }
 0x22c   : > { %1489 = vmatpush3.msra.mxu1 %v1373_v34 }
 0x22d   : > { %1493 = vmatprep.subr.mxu1 %v1016_v41 }
 0x2e5   : > { %v1459_v45 = vpop.f32.mrf.mxu1 }
 0x2e6   : > { %v690_v46 = vsel %vm447_vm0, %v1459_v45, -inf }
 0x2e7   : > { %691 = vmax.xlane.f32.xlu1 %v690_v46  ;;  %v678_v47 = vpop.f32.mrf.mxu1 }
 0x2e8   : > { %v687_v48 = vsel %vm447_vm0, %v678_v47, -inf }
 0x2e9   : > { %688 = vmax.xlane.f32.xlu0 %v687_v48 }
 0x370   : > { %v692_v49 = vpop.xlane.xlu1 %691 }
 0x371   : > { %v694_v50 = vsub.f32 %v1459_v45, %v692_v49 }
 0x372   : > { %v689_v51 = vpop.xlane.xlu0 %688 }
 0x373   : > { %v697_v52 = vmul.f32 1.442695, %v694_v50  ;;  %v693_v53 = vsub.f32 %v678_v47, %v689_v51  ;;  %v1387_v51 = vld [vmem:[%s2120_s6] ss:$0 sm:$0xff] }
 0x375   : > { %1601 = vpow2.f32 %v697_v52  ;;  %v695_v54 = vmul.f32 1.442695, %v693_v53 }
 0x377   : > { %1603 = vpow2.f32 %v695_v54 }
 0x382   : > { %v1602_v55 = vpop.eup %1601 }
 0x383   : > { %v702_v56 = vsel %vm447_vm0, %v1602_v55, 0.0 }
 0x384   : > { %v1604_v57 = vpop.eup %1603  ;;  %703 = vadd.xlane.f32.xlu1 %v702_v56 }
 0x385   : > { %v699_v58 = vsel %vm447_vm0, %v1604_v57, 0.0 }
 0x386   : > { %700 = vadd.xlane.f32.xlu0 %v699_v58 }
 0x395   : > { %804 = vrot.lane.b32.xlu1 %v584_v44, %s1719_s25  ;;  %v1013_v44 = vld [vmem:[%s2119_s5] sm:$0xff] }
 0x39c   : > { %802 = vrot.lane.b32.xlu0 %v583_v43, %s1719_s25  ;;  %v1014_v43 = vld [vmem:[%s2119_s5 + $0x8] sm:$0xff]  ;;  %s2127_s25 = sshll.u32 %s2024_s22, 7 }
 0x39d   : > { %s2033_s17 = scalar_lea.hbm %s2123_s9, %s2127_s25 }
 0x40d   : > { %v704_v2 = vpop.xlane.xlu1 %703 }
 0x40e   : > { %1605 = vrcp.f32 %v704_v2 }
 0x40f   : > { %v701_v3 = vpop.xlane.xlu0 %700 }
 0x410   : > { %1607 = vrcp.f32 %v701_v3 }
 0x411   : > { %v805_v12 = vpop.permute.xlu1 %804 }
 0x413   : > { %v803_v9 = vpop.permute.xlu0 %802 }
 0x41b   : > { %v1606_v4 = vpop.eup %1605 }
 0x41c   : > { %v708_v5 = vmul.f32 %v1606_v4, %v1602_v55 }
 0x41d   : > { %v1608_v6 = vpop.eup %1607 }
 0x41e   : > { %v706_v7 = vmul.f32 %v1608_v6, %v1604_v57  ;;  %710 = vst.msk [vmem:[%s1956_s28 + $0x8] sm:$0xff] %vm447_vm0, %v708_v5 }
 0x420   : > { %709 = vst.msk [vmem:[%s1956_s28] sm:$0xff] %vm447_vm0, %v706_v7  ;;  %1468 = vmatprep.mubr.msk.f32.mxu0 %vm447_vm0, %v706_v7 }
 0x421   : > { %1469 = vmatmul.mubr.msk.f32.vlgmr.msra.gmra.mxu0 %vm447_vm0, %v708_v5 }
 0x422   : > { %1472 = vmatpush3.xpose.msk.msra.mxu0 %vm593_vm1, %v1372_v63  ;;  %1479 = vmatprep.mubr.msk.f32.mxu0 %vm593_vm1, %v803_v9 }
 0x423   : > { %1473 = vmatprep.subr.msk.mxu0 %vm593_vm1, %v1371_v8 }
 0x426   : > { %1474 = vmatpush3.xpose.msk.msra.mxu0 %vm593_vm1, %v1371_v8 }
 0x427   : > { %1475 = vmatprep.subr.msk.mxu0 %vm593_vm1, %v1370_v10 }
 0x42a   : > { %1476 = vmatpush3.xpose.msk.msra.mxu0 %vm593_vm1, %v1370_v10 }
 0x42b   : > { %1477 = vmatprep.subr.msk.mxu0 %vm593_vm1, %v1369_v11 }
 0x42e   : > { %1478 = vmatpush3.xpose.msk.msra.mxu0 %vm593_vm1, %v1369_v11 }
 0x431   : > { %1480 = vmatmul.mubr.msk.f32.vlgmr.msra.gmra.mxu0 %vm593_vm1, %v805_v12 }
 0x4e1   : > { %v1976_v13 = vpop.f32.mrf.mxu0 }
 0x4e3   : > { %v1978_v14 = vpop.f32.mrf.mxu0 }
 0x4f1   : > { %v1481_v15 = vpop.f32.mrf.mxu0 }
 0x4f2   : > { %v900_v16 = vsel %vm447_vm0, %v1481_v15, -inf }
 0x4f3   : > { %901 = vmax.xlane.f32.xlu0 %v900_v16  ;;  %v888_v17 = vpop.f32.mrf.mxu0 }
 0x4f4   : > { %v897_v18 = vsel %vm447_vm0, %v888_v17, -inf }
 0x4f5   : > { %898 = vmax.xlane.f32.xlu1 %v897_v18 }
 0x57c   : > { %v902_v19 = vpop.xlane.xlu0 %901 }
 0x57d   : > { %v904_v20 = vsub.f32 %v1481_v15, %v902_v19 }
 0x57e   : > { %v899_v21 = vpop.xlane.xlu1 %898 }
 0x57f   : > { %v907_v22 = vmul.f32 1.442695, %v904_v20  ;;  %v903_v23 = vsub.f32 %v888_v17, %v899_v21 }
 0x581   : > { %1609 = vpow2.f32 %v907_v22  ;;  %v905_v24 = vmul.f32 1.442695, %v903_v23 }
 0x583   : > { %1611 = vpow2.f32 %v905_v24 }
 0x58e   : > { %v1610_v25 = vpop.eup %1609 }
 0x58f   : > { %v912_v26 = vsel %vm447_vm0, %v1610_v25, 0.0 }
 0x590   : > { %v1612_v28 = vpop.eup %1611  ;;  %913 = vadd.xlane.f32.xlu1 %v912_v26 }
 0x591   : > { %v909_v30 = vsel %vm447_vm0, %v1612_v28, 0.0 }
 0x592   : > { %910 = vadd.xlane.f32.xlu0 %v909_v30 }
 0x619   : > { %v914_v35 = vpop.xlane.xlu1 %913 }
 0x61a   : > { %1613 = vrcp.f32 %v914_v35 }
 0x61b   : > { %v911_v36 = vpop.xlane.xlu0 %910 }
 0x61c   : > { %1615 = vrcp.f32 %v911_v36 }
 0x627   : > { %v1614_v37 = vpop.eup %1613 }
 0x628   : > { %v918_v38 = vmul.f32 %v1614_v37, %v1610_v25 }
 0x629   : > { %v1616_v39 = vpop.eup %1615 }
 0x62a   : > { %v916_v40 = vmul.f32 %v1616_v39, %v1612_v28  ;;  %1384 = vst.msk [vmem:[%s1956_s28 + $0x18] sm:$0xff] %vm447_vm0, %v918_v38 }
 0x62c   : > { %1383 = vst.msk [vmem:[%s1956_s28 + $0x10] sm:$0xff] %vm447_vm0, %v916_v40  ;;  %1490 = vmatprep.mubr.msk.f32.mxu1 %vm447_vm0, %v916_v40 }
 0x62d   : > { %1491 = vmatmul.mubr.msk.f32.vlgmr.msra.gmra.mxu1 %vm447_vm0, %v918_v38 }
 0x62e   : > { %1494 = vmatpush3.msra.mxu1 %v1016_v41 }
 0x62f   : > { %1495 = vmatprep.subr.mxu1 %v1015_v42 }
 0x630   : > { %1496 = vmatpush3.msra.mxu1 %v1015_v42 }
 0x631   : > { %1497 = vmatprep.subr.mxu1 %v1014_v43 }
 0x632   : > { %1498 = vmatpush3.msra.mxu1 %v1014_v43 }
 0x633   : > { %1499 = vmatprep.subr.mxu1 %v1013_v44 }
 0x634   : > { %1500 = vmatpush3.msra.mxu1 %v1013_v44 }
 0x6ed   : > { %v1492_v45 = vpop.f32.mrf.mxu1 }
 0x6ee   : > { %1007 = vrot.lane.b32.xlu1 %v1492_v45, %s1720_s24 }
 0x6ef   : > { %v994_v46 = vpop.f32.mrf.mxu1 }
 0x6f0   : > { %1005 = vrot.lane.b32.xlu0 %v994_v46, %s1720_s24  ;;  %s1160_s24 = sshll.u32 %s413_s29, 4  ;;  %s2037_s24 = int_to_ptr.vmem [resolvable:$true] %s1160_s24 }
 0x6f1   : > { %s1621_s23 = scalar_lea.vmem %s2037_s24, 256  ;;  %p1628_p4 = scmp.lt.s32.totalorder %s2037_s24, %s1626_s30 }
 0x6f2   : > { %p1622_p0 = scmp.ne.s32.totalorder %s2037_s24, %s1621_s23  ;;  %p1629_p5 = scmp.lt.s32.totalorder %s1627_s16, %s1621_s23 }
 0x6f4   : > { %p1623_p1 = pnand %p1622_p0, %p1837_p3  ;;  %p1630_p6 = por %p1629_p5, %p1628_p4 }
 0x6f6   : > { %p1624_p2 = pneg %p1623_p1 }
 0x6f8   : > { %p1631_p7 = pnand %p1630_p6, %p1624_p2 }
 0x760   : > { %v1008_v47 = vpop.permute.xlu1 %1007 }
 0x761   : > { %v1012_v50 = vsel %vm593_vm1, %v1976_v13, %v1008_v47 }
 0x762   : > { %v1006_v48 = vpop.permute.xlu0 %1005 }
 0x763   : > { %v1011_v49 = vsel %vm593_vm1, %v1978_v14, %v1006_v48 }
 0x764   : > { %1501 = vmatprep.mubr.msk.f32.mxu1 %vm447_vm0, %v1011_v49 }
 0x765   : > { %1502 = vmatmul.mubr.msk.f32.vlgmr.msra.gmra.mxu1 %vm447_vm0, %v1012_v50 }
 0x825   : > { %v1503_v52 = vpop.f32.mrf.mxu1 }
 0x826   : > { %v1102_v53 = vadd.f32 %v1503_v52, %v1387_v51 }
 0x827   : > { %v1096_v54 = vpop.f32.mrf.mxu1 }
 0x828   : > { %v1097_v55 = vadd.f32 %v1387_v51, %v1096_v54  ;;  %v1106_v56 = vadd.f32 %v1102_v53, %v1872_v1 }
 0x82a   : > { %v1110_v57 = vsel %vm447_vm0, %v1106_v56, 0.0  ;;  %v1105_v58 = vadd.f32 %v1097_v55, %v1870_v0 }
 0x82b   : > { %1111 = vadd.xlane.f32.xlu0 %v1110_v57 }
 0x82c   : > { %v1107_v59 = vsel %vm447_vm0, %v1105_v58, 0.0 }
 0x82d   : > { %1108 = vadd.xlane.f32.xlu1 %v1107_v59 }
 0x8b4   : > { %v1112_v60 = vpop.xlane.xlu0 %1111 }
 0x8b5   : > { %v1114_v61 = vmul.f32 0.03125, %v1112_v60 }
 0x8b6   : > { %v1109_v62 = vpop.xlane.xlu1 %1108 }
 0x8b7   : > { %v1116_v63 = vsub.f32 %v1106_v56, %v1114_v61  ;;  %v1113_v2 = vmul.f32 0.03125, %v1109_v62 }
 0x8b9   : > { %v1115_v3 = vsub.f32 %v1105_v58, %v1113_v2  ;;  %v1118_v4 = vmul.f32 %v1116_v63, %v1116_v63 }
 0x8bb   : > { %v1122_v1 = vsel %vm447_vm0, %v1118_v4, 0.0  ;;  %v1117_v5 = vmul.f32 %v1115_v3, %v1115_v3 }
 0x8bc   : > { %1123 = vadd.xlane.f32.xlu1 %v1122_v1 }
 0x8bd   : > { %v1119_v0 = vsel %vm447_vm0, %v1117_v5, 0.0 }
 0x8be   : > { %1120 = vadd.xlane.f32.xlu0 %v1119_v0 }
 0x945   : > { %v1124_v6 = vpop.xlane.xlu1 %1123 }
 0x946   : > { %v1126_v7 = vmul.f32 0.03125, %v1124_v6 }
 0x947   : > { %v1121_v8 = vpop.xlane.xlu0 %1120 }
 0x948   : > { %v1128_v9 = vadd.f32 1e-05, %v1126_v7  ;;  %v1125_v10 = vmul.f32 0.03125, %v1121_v8 }
 0x94a   : > { %1617 = vrsqrt.f32 %v1128_v9  ;;  %v1127_v11 = vadd.f32 1e-05, %v1125_v10 }
 0x94c   : > { %1619 = vrsqrt.f32 %v1127_v11 }
 0x957   : > { %v1618_v12 = vpop.eup %1617 }
 0x958   : > { %v1132_v13 = vmul.f32 %v1618_v12, %v1116_v63 }
 0x959   : > { %v1620_v14 = vpop.eup %1619 }
 0x95a   : > { %v1134_v15 = vmul.f32 %v1911_v27, %v1132_v13  ;;  %v1131_v16 = vmul.f32 %v1620_v14, %v1115_v3 }
 0x95c   : > { %v1133_v17 = vmul.f32 %v1911_v27, %v1131_v16  ;;  %v1136_v18 = vadd.f32 %v1916_v29, %v1134_v15 }
 0x95e   : > { %v1135_v19 = vadd.f32 %v1916_v29, %v1133_v17  ;;  %1138 = vst.msk [vmem:[%s413_s29 + $0x8] sm:$0xff] %vm447_vm0, %v1136_v18 }
 0x960   : > { %1137 = vst.msk [vmem:[%s413_s29] sm:$0xff] %vm447_vm0, %v1135_v19 }
 0x961   : > { %1634 = shalt.err (!%p1631_p7)
}
 0x962   : > { %s1635_s29 = scalar_lea.hbm %s2033_s17, 256  ;;  %s1639_s0 = scalar_lea.hbm %s2123_s9, 1024 }
 0x963   : > { %p1636_p9 = scmp.ne.s32.totalorder %s2033_s17, %s1635_s29  ;;  %p1640_p12 = scmp.lt.s32.totalorder %s2033_s17, %s2123_s9 }
 0x964   : > { %p1641_p13 = scmp.lt.s32.totalorder %s1639_s0, %s1635_s29 }
 0x965   : > { %p1637_p10 = pnand %p1636_p9, %p1837_p3 }
 0x966   : > { %p1642_p0 = por %p1641_p13, %p1640_p12 }
 0x967   : > { %p1638_p11 = pneg %p1637_p10 }
 0x969   : > { %p1643_p1 = pnand %p1642_p0, %p1638_p11 }
 0x96b   : > { %1646 = shalt.err (!%p1643_p1)
}
 0x96c   : > { %s1722_s23 = smov 128   ;;  %s1723_s30 = smov 8  }
 0x96d   : > { %s2140_s16 = scalar_lea.sflag [#allocation3], %s1951_s21  ;;  %s1145_s25 = scalar_lea.sflag [#allocation5], %s1951_s21 }
 0x96e   : > { %1504 = dma.vmem_to_hbm [thread:$0]  (%p1837_p3), %s2037_s24, 256, %s2033_s17, %s2140_s16, %s1722_s23, %s1722_s23, %s1723_s30  }
 0x96f   : > { %s2141_s12 = sshll.u32 %s2024_s22, 7  ;;  %s1188_s29 = sshll.u32 %s1956_s28, 4  ;;  %s1189_s29 = int_to_ptr.vmem [resolvable:$true] %s1188_s29 }
 0x970   : > { %s1177_s2 = scalar_lea.hbm %s2124_s10, %s2141_s12  ;;  %s1724_s0 = smov 256  }
 0x971   : > { %1505 = sst [smem:[#allocation7]] (%p1837_p3), %s1724_s0  ;;  %s1725_s21 = smov 1024  }
 0x972   : > { %1506 = sst [smem:[#allocation7 + $0x1]] (%p1837_p3), %s1725_s21  ;;  %s1726_s22 = smov 2  }
 0x973   : > { %1507 = sst [smem:[#allocation7 + $0x2]] (%p1837_p3), %s1726_s22  ;;  %s1727_s3 = smov 128  }
 0x974   : > { %1508 = sst [smem:[#allocation7 + $0x3]] (%p1837_p3), %s1727_s3  ;;  %s1728_s24 = smov 8  }
 0x975   : > { %1509 = sst [smem:[#allocation7 + $0x4]] (%p1837_p3), %s1727_s3  ;;  %s1729_s17 = smov 131072  }
 0x976   : > { %1510 = sst [smem:[#allocation7 + $0x5]] (%p1837_p3), %s1728_s24  ;;  %s1730_s28 = smov 0  }
 0x977   : > { %1511 = dma.general (%p1837_p3), %s1189_s29, 512, %s1177_s2, %s1145_s25, %s1729_s17, [#allocation7], %s1730_s28, 0  }
 0x978 PF: > { %p1521_p2 = scmp.ge.s32.totalorder %s1717_s20, 2  ;;  %s1216_s23 = sand.u32 1, %s1689_s13  }
 0x979   : > { %s1217_s30 = scalar_lea.sflag [#allocation3], %s1216_s23 }
 0x97a   : > { %p1515_p4 = pnand %p1521_p2, %p1846_p8 }
 0x97c   : > { %p1516_p5 = pneg %p1515_p4 }
 0x97e   : > { %1680 = dma.done.wait (%p1516_p5), %s1217_s30, 256  }
 0x97f   : > { %1682 = vsyncadd (%p1516_p5), %s1217_s30, 4294967040  ;;  %s1226_s16 = scalar_lea.sflag [#allocation5], %s1216_s23 }
 0x980   : > { %1684 = dma.done.wait (%p1516_p5), %s1226_s16, 512  }
 0x981   : > { %1686 = vsyncadd (%p1516_p5), %s1226_s16, 4294966784  ;;  %s27_s20 = sadd.s32 1, %s1717_s20   ;;  %s2142_s26 = sld [smem:[#allocation10_spill]] }
 0x982   : > { %p24_p6 = scmp.ge.s32.totalorder %s27_s20, 6   ;;  %s2143_s25 = sld [smem:[#allocation11_spill]] }
 0x983   : > { %s2144_s13 = smov %s1693_s14  ;;  %s2145_s14 = smov %s1697_s15 }
 0x984   : > { %s2146_s15 = smov %s1855_s11  ;;  %s2147_s16 = smov %s1709_s18 }
 0x985   : > { %s2148_s17 = smov %s1713_s19  ;;  %26 = sbr.rel (!%p24_p6) target bundleno = 12 (0xc), region = 122 }
 0x987   : > { %s2149_s18 = smov %s2142_s26 }
 0x988   : > { %s2150_s19 = smov %s2143_s25 }
 0x98a   :  { %1231 = vsyncpa [#allocation3], 1 }
 0x98b   :  { %1233 = vsyncpa [#allocation3 + $0x1], 1 }
 0x98c   :  { %1234 = vsyncpa [#allocation5], 1 }
 0x98d   :  { %1236 = vsyncpa [#allocation5 + $0x1], 1 }

</bundles_post_ra>
